<compile_context>
chip_gen: v6e
topology: v6e:2x2x1
jax: 0.10.0
libtpu: 0.0.40
codegen_flags: <defaults>
</compile_context>

<pallas_src>
import functools

import jax
import jax.numpy as jnp
from jax.experimental import pallas as pl
from jax.experimental.pallas import tpu as pltpu


def _round_up(x, m):
    return (x + m - 1) // m * m


def _cdiv(a, b):
    return -(-a // b)


def mlp_kernel(x_ref, w1_ref, b1_ref, w2_ref, b2_ref,
               w3_ref, b3_ref, w4_ref, b4_ref, o_ref):
    # x arrives fp32; cast to bf16 in-kernel (VPU op, hidden under pipeline).
    # Every dot accumulates in fp32 on the MXU; bias-add + ReLU on fp32.
    x = x_ref[...].astype(jnp.bfloat16)

    h = jnp.dot(x, w1_ref[...],
                preferred_element_type=jnp.float32) + b1_ref[...]
    h = jnp.maximum(h, 0.0)

    h = jnp.dot(h.astype(jnp.bfloat16), w2_ref[...],
                preferred_element_type=jnp.float32) + b2_ref[...]
    h = jnp.maximum(h, 0.0)

    h = jnp.dot(h.astype(jnp.bfloat16), w3_ref[...],
                preferred_element_type=jnp.float32) + b3_ref[...]
    h = jnp.maximum(h, 0.0)

    out = jnp.dot(h.astype(jnp.bfloat16), w4_ref[...],
                  preferred_element_type=jnp.float32) + b4_ref[...]
    # Lane-dense (multiple-of-128) bf16 store: unmasked vst, half the
    # writeback bytes of fp32.
    o_ref[...] = out.astype(o_ref.dtype)


def prepare_params(params, lane=128):
    """One-time weight prep (run once, NOT per forward call).

    Casts weights to bf16 and zero-pads the last layer to a lane-dense
    output width.  Biases stay fp32 (added on the fp32 accumulator).
    """
    C = params["w4"].shape[1]
    C_pad = _round_up(C, lane)
    return {
        "w1": params["w1"].astype(jnp.bfloat16),
        "b1": params["b1"],
        "w2": params["w2"].astype(jnp.bfloat16),
        "b2": params["b2"],
        "w3": params["w3"].astype(jnp.bfloat16),
        "b3": params["b3"],
        "w4": jnp.pad(params["w4"],
                      ((0, 0), (0, C_pad - C))).astype(jnp.bfloat16),
        "b4": jnp.pad(params["b4"], ((0, 0), (0, C_pad - C))),
    }


@functools.partial(jax.jit, static_argnames=("tb", "single_buffer"))
def _mlp_forward_padded(x, prepped, *, tb=2048, single_buffer=True):
    """Runs the kernel; returns the padded [B_pad, C_pad] bf16 logits."""
    B, K = x.shape
    H = prepped["w1"].shape[1]
    C_pad = prepped["w4"].shape[1]

    # --- batch tiling: pick step count first, then distribute rows ---------
    # Pads only to the sublane multiple (8) per step -> no TB-sized over-pad.
    B8 = _round_up(B, 8)
    n_steps = max(1, _cdiv(B8, tb))
    if n_steps > 1 and n_steps % 2:
        n_steps += 1               # even step count keeps both v7x TCs busy
    TB = _round_up(_cdiv(B8, n_steps), 8)
    B_pad = TB * n_steps

    x_p = x if B_pad == B else jnp.pad(x, ((0, B_pad - B), (0, 0)))

    # Weights/biases: same block every step -> VMEM-resident across the grid.
    if single_buffer:
        # Single-buffer the resident operands (double-buffering them is pure
        # VMEM waste; matters once hidden_layers scales into the MiB range).
        def resident(shape):
            return pl.BlockSpec(shape, lambda i: (0, 0),
                                pipeline_mode=pl.Buffered(buffer_count=1))
    else:
        def resident(shape):
            return pl.BlockSpec(shape, lambda i: (0, 0))

    out = pl.pallas_call(
        mlp_kernel,
        out_shape=jax.ShapeDtypeStruct((B_pad, C_pad), jnp.bfloat16),
        grid=(n_steps,),
        in_specs=[
            pl.BlockSpec((TB, K), lambda i: (i, 0)),     # x: streamed per step
            resident((K, H)), resident((1, H)),          # w1, b1
            resident((H, H)), resident((1, H)),          # w2, b2
            resident((H, H)), resident((1, H)),          # w3, b3
            resident((H, C_pad)), resident((1, C_pad)),  # w4, b4 (lane-padded)
        ],
        out_specs=pl.BlockSpec((TB, C_pad), lambda i: (i, 0)),
        compiler_params=pltpu.CompilerParams(
            dimension_semantics=("parallel",)),
    )(x_p, prepped["w1"], prepped["b1"], prepped["w2"], prepped["b2"],
      prepped["w3"], prepped["b3"], prepped["w4"], prepped["b4"])

    return out


def mlp_forward(x, prepped, output_classes, *, tb=2048):
    """Model1.forward equivalent: returns [B, output_classes] float32.

    For maximum throughput, consume `_mlp_forward_padded` directly downstream
    (padded bf16, no eager slice/upcast copy).
    """
    try:
        out = _mlp_forward_padded(x, prepped, tb=tb, single_buffer=True)
    except Exception:
        # Fallback if this JAX build rejects Buffered(1) on top-level specs.
        out = _mlp_forward_padded(x, prepped, tb=tb, single_buffer=False)
    return out[:x.shape[0], :output_classes].astype(jnp.float32)


def init_params(key, input_size, hidden_layers, output_classes):
    """Deterministic init mimicking nn.Linear's U(-1/sqrt(fan_in), 1/sqrt(fan_in))."""
    dims = [(input_size, hidden_layers),
            (hidden_layers, hidden_layers),
            (hidden_layers, hidden_layers),
            (hidden_layers, output_classes)]
    params = {}
    for i, (fan_in, fan_out) in enumerate(dims, start=1):
        key, kw, kb = jax.random.split(key, 3)
        bound = 1.0 / (fan_in ** 0.5)
        params[f"w{i}"] = jax.random.uniform(
            kw, (fan_in, fan_out), jnp.float32, -bound, bound)
        # bias kept 2D [1, fan_out] so it broadcasts cleanly on the VPU
        params[f"b{i}"] = jax.random.uniform(
            kb, (1, fan_out), jnp.float32, -bound, bound)
    return params


if __name__ == "__main__":
    input_size = 32
    hidden_layers = 64
    output_classes = 10
    batch = 8

    key = jax.random.PRNGKey(0)
    key, kx = jax.random.split(key)
    x = jax.random.normal(kx, (batch, input_size), jnp.float32)
    params = init_params(key, input_size, hidden_layers, output_classes)

    # One-time weight prep (bf16 cast + lane padding), outside the hot path.
    prepped = prepare_params(params)

    out = mlp_forward(x, prepped, output_classes)
    out = jax.block_until_ready(out)

    # Pure-JAX reference with the same bf16-operand / fp32-accumulate math
    # (intentional precision choice; extra slack for the bf16 output store).
    def ref(x, p):
        bf = lambda a: a.astype(jnp.bfloat16)
        h = jnp.maximum(jnp.dot(bf(x), bf(p["w1"]),
                                preferred_element_type=jnp.float32) + p["b1"], 0.0)
        h = jnp.maximum(jnp.dot(bf(h), bf(p["w2"]),
                                preferred_element_type=jnp.float32) + p["b2"], 0.0)
        h = jnp.maximum(jnp.dot(bf(h), bf(p["w3"]),
                                preferred_element_type=jnp.float32) + p["b3"], 0.0)
        return jnp.dot(bf(h), bf(p["w4"]),
                       preferred_element_type=jnp.float32) + p["b4"]

    expected = ref(x, params)
    assert out.shape == (batch, output_classes)
    assert jnp.allclose(out, expected, atol=2e-2, rtol=2e-2), (
        jnp.max(jnp.abs(out - expected)))

    print("KERNEL_OK")
</pallas_src>

<mosaic_0001>
module attributes {stable_mosaic.version = 11 : i64} {
  func.func @mlp_kernel(%arg0: i32, %arg1: memref<8x32xf32, #tpu.memory_space<vmem>>, %arg2: memref<32x64xbf16, #tpu.memory_space<vmem>>, %arg3: memref<1x64xf32, #tpu.memory_space<vmem>>, %arg4: memref<64x64xbf16, #tpu.memory_space<vmem>>, %arg5: memref<1x64xf32, #tpu.memory_space<vmem>>, %arg6: memref<64x64xbf16, #tpu.memory_space<vmem>>, %arg7: memref<1x64xf32, #tpu.memory_space<vmem>>, %arg8: memref<64x128xbf16, #tpu.memory_space<vmem>>, %arg9: memref<1x128xf32, #tpu.memory_space<vmem>>, %arg10: memref<8x128xbf16, #tpu.memory_space<vmem>>) attributes {dimension_semantics = [#tpu.dimension_semantics<parallel>], iteration_bounds = array<i64: 1>, scalar_prefetch = 0 : i64, scratch_operands = 0 : i64, tpu.core_type = #tpu.core_type<tc>, window_params = [{transform_indices = @transform_0, window_bounds = array<i64: 8, 32>}, {pipeline_mode = #tpu.pipeline_mode<synchronous>, transform_indices = @transform_1, window_bounds = array<i64: 32, 64>}, {pipeline_mode = #tpu.pipeline_mode<synchronous>, transform_indices = @transform_2, window_bounds = array<i64: 1, 64>}, {pipeline_mode = #tpu.pipeline_mode<synchronous>, transform_indices = @transform_3, window_bounds = array<i64: 64, 64>}, {pipeline_mode = #tpu.pipeline_mode<synchronous>, transform_indices = @transform_4, window_bounds = array<i64: 1, 64>}, {pipeline_mode = #tpu.pipeline_mode<synchronous>, transform_indices = @transform_5, window_bounds = array<i64: 64, 64>}, {pipeline_mode = #tpu.pipeline_mode<synchronous>, transform_indices = @transform_6, window_bounds = array<i64: 1, 64>}, {pipeline_mode = #tpu.pipeline_mode<synchronous>, transform_indices = @transform_7, window_bounds = array<i64: 64, 128>}, {pipeline_mode = #tpu.pipeline_mode<synchronous>, transform_indices = @transform_8, window_bounds = array<i64: 1, 128>}, {transform_indices = @transform_9, window_bounds = array<i64: 8, 128>}]} {
    %c0 = arith.constant 0 : index
    %c0_0 = arith.constant 0 : index
    %0 = vector.load %arg1[%c0, %c0_0] : memref<8x32xf32, #tpu.memory_space<vmem>>, vector<8x32xf32>
    %1 = arith.truncf %0 : vector<8x32xf32> to vector<8x32xbf16>
    %c0_1 = arith.constant 0 : index
    %c0_2 = arith.constant 0 : index
    %2 = vector.load %arg2[%c0_1, %c0_2] : memref<32x64xbf16, #tpu.memory_space<vmem>>, vector<32x64xbf16>
    %cst = arith.constant dense<0.000000e+00> : vector<8x64xf32>
    %3 = tpu.matmul %1, %2, %cst {dimension_numbers = #tpu.dot_dimension_numbers<[1], [0], [0], [1], [0, 0, 1, 1], [], []>} : vector<8x32xbf16>, vector<32x64xbf16>, vector<8x64xf32> -> vector<8x64xf32>
    %c0_3 = arith.constant 0 : index
    %c0_4 = arith.constant 0 : index
    %4 = vector.load %arg3[%c0_3, %c0_4] : memref<1x64xf32, #tpu.memory_space<vmem>>, vector<1x64xf32>
    %5 = vector.broadcast %4 : vector<1x64xf32> to vector<8x64xf32>
    %6 = arith.addf %3, %5 : vector<8x64xf32>
    %cst_5 = arith.constant 0.000000e+00 : f32
    %7 = vector.broadcast %cst_5 : f32 to vector<8x64xf32>
    %8 = arith.maximumf %6, %7 : vector<8x64xf32>
    %9 = arith.truncf %8 : vector<8x64xf32> to vector<8x64xbf16>
    %c0_6 = arith.constant 0 : index
    %c0_7 = arith.constant 0 : index
    %10 = vector.load %arg4[%c0_6, %c0_7] : memref<64x64xbf16, #tpu.memory_space<vmem>>, vector<64x64xbf16>
    %cst_8 = arith.constant dense<0.000000e+00> : vector<8x64xf32>
    %11 = tpu.matmul %9, %10, %cst_8 {dimension_numbers = #tpu.dot_dimension_numbers<[1], [0], [0], [1], [0, 0, 1, 1], [], []>} : vector<8x64xbf16>, vector<64x64xbf16>, vector<8x64xf32> -> vector<8x64xf32>
    %c0_9 = arith.constant 0 : index
    %c0_10 = arith.constant 0 : index
    %12 = vector.load %arg5[%c0_9, %c0_10] : memref<1x64xf32, #tpu.memory_space<vmem>>, vector<1x64xf32>
    %13 = vector.broadcast %12 : vector<1x64xf32> to vector<8x64xf32>
    %14 = arith.addf %11, %13 : vector<8x64xf32>
    %cst_11 = arith.constant 0.000000e+00 : f32
    %15 = vector.broadcast %cst_11 : f32 to vector<8x64xf32>
    %16 = arith.maximumf %14, %15 : vector<8x64xf32>
    %17 = arith.truncf %16 : vector<8x64xf32> to vector<8x64xbf16>
    %c0_12 = arith.constant 0 : index
    %c0_13 = arith.constant 0 : index
    %18 = vector.load %arg6[%c0_12, %c0_13] : memref<64x64xbf16, #tpu.memory_space<vmem>>, vector<64x64xbf16>
    %cst_14 = arith.constant dense<0.000000e+00> : vector<8x64xf32>
    %19 = tpu.matmul %17, %18, %cst_14 {dimension_numbers = #tpu.dot_dimension_numbers<[1], [0], [0], [1], [0, 0, 1, 1], [], []>} : vector<8x64xbf16>, vector<64x64xbf16>, vector<8x64xf32> -> vector<8x64xf32>
    %c0_15 = arith.constant 0 : index
    %c0_16 = arith.constant 0 : index
    %20 = vector.load %arg7[%c0_15, %c0_16] : memref<1x64xf32, #tpu.memory_space<vmem>>, vector<1x64xf32>
    %21 = vector.broadcast %20 : vector<1x64xf32> to vector<8x64xf32>
    %22 = arith.addf %19, %21 : vector<8x64xf32>
    %cst_17 = arith.constant 0.000000e+00 : f32
    %23 = vector.broadcast %cst_17 : f32 to vector<8x64xf32>
    %24 = arith.maximumf %22, %23 : vector<8x64xf32>
    %25 = arith.truncf %24 : vector<8x64xf32> to vector<8x64xbf16>
    %c0_18 = arith.constant 0 : index
    %c0_19 = arith.constant 0 : index
    %26 = vector.load %arg8[%c0_18, %c0_19] : memref<64x128xbf16, #tpu.memory_space<vmem>>, vector<64x128xbf16>
    %cst_20 = arith.constant dense<0.000000e+00> : vector<8x128xf32>
    %27 = tpu.matmul %25, %26, %cst_20 {dimension_numbers = #tpu.dot_dimension_numbers<[1], [0], [0], [1], [0, 0, 1, 1], [], []>} : vector<8x64xbf16>, vector<64x128xbf16>, vector<8x128xf32> -> vector<8x128xf32>
    %c0_21 = arith.constant 0 : index
    %c0_22 = arith.constant 0 : index
    %28 = vector.load %arg9[%c0_21, %c0_22] : memref<1x128xf32, #tpu.memory_space<vmem>>, vector<1x128xf32>
    %29 = vector.broadcast %28 : vector<1x128xf32> to vector<8x128xf32>
    %30 = arith.addf %27, %29 : vector<8x128xf32>
    %31 = arith.truncf %30 : vector<8x128xf32> to vector<8x128xbf16>
    %c0_23 = arith.constant 0 : index
    %c0_24 = arith.constant 0 : index
    %32 = vector.load %arg10[%c0_23, %c0_24] : memref<8x128xbf16, #tpu.memory_space<vmem>>, vector<8x128xbf16>
    tpu.vector_store %arg10[%c0_23, %c0_24], %31 {strides = array<i32>} : memref<8x128xbf16, #tpu.memory_space<vmem>>, vector<8x128xbf16>,
    return
  }
  func.func @transform_0(%arg0: i32) -> (i32, i32) {
    %c0_i32 = arith.constant 0 : i32
    %c0_i32_0 = arith.constant 0 : i32
    return %arg0, %c0_i32 : i32, i32
  }
  func.func @transform_1(%arg0: i32) -> (i32, i32) {
    %c0_i32 = arith.constant 0 : i32
    %c0_i32_0 = arith.constant 0 : i32
    %c0_i32_1 = arith.constant 0 : i32
    return %c0_i32, %c0_i32_0 : i32, i32
  }
  func.func @transform_2(%arg0: i32) -> (i32, i32) {
    %c0_i32 = arith.constant 0 : i32
    %c0_i32_0 = arith.constant 0 : i32
    %c0_i32_1 = arith.constant 0 : i32
    return %c0_i32, %c0_i32_0 : i32, i32
  }
  func.func @transform_3(%arg0: i32) -> (i32, i32) {
    %c0_i32 = arith.constant 0 : i32
    %c0_i32_0 = arith.constant 0 : i32
    %c0_i32_1 = arith.constant 0 : i32
    return %c0_i32, %c0_i32_0 : i32, i32
  }
  func.func @transform_4(%arg0: i32) -> (i32, i32) {
    %c0_i32 = arith.constant 0 : i32
    %c0_i32_0 = arith.constant 0 : i32
    %c0_i32_1 = arith.constant 0 : i32
    return %c0_i32, %c0_i32_0 : i32, i32
  }
  func.func @transform_5(%arg0: i32) -> (i32, i32) {
    %c0_i32 = arith.constant 0 : i32
    %c0_i32_0 = arith.constant 0 : i32
    %c0_i32_1 = arith.constant 0 : i32
    return %c0_i32, %c0_i32_0 : i32, i32
  }
  func.func @transform_6(%arg0: i32) -> (i32, i32) {
    %c0_i32 = arith.constant 0 : i32
    %c0_i32_0 = arith.constant 0 : i32
    %c0_i32_1 = arith.constant 0 : i32
    return %c0_i32, %c0_i32_0 : i32, i32
  }
  func.func @transform_7(%arg0: i32) -> (i32, i32) {
    %c0_i32 = arith.constant 0 : i32
    %c0_i32_0 = arith.constant 0 : i32
    %c0_i32_1 = arith.constant 0 : i32
    return %c0_i32, %c0_i32_0 : i32, i32
  }
  func.func @transform_8(%arg0: i32) -> (i32, i32) {
    %c0_i32 = arith.constant 0 : i32
    %c0_i32_0 = arith.constant 0 : i32
    %c0_i32_1 = arith.constant 0 : i32
    return %c0_i32, %c0_i32_0 : i32, i32
  }
  func.func @transform_9(%arg0: i32) -> (i32, i32) {
    %c0_i32 = arith.constant 0 : i32
    %c0_i32_0 = arith.constant 0 : i32
    return %arg0, %c0_i32 : i32, i32
  }
}

module attributes {stable_mosaic.version = 11 : i64} {
  func.func @mlp_kernel(%arg0: i32, %arg1: memref<8x32xf32, #tpu.memory_space<vmem>>, %arg2: memref<32x64xbf16, #tpu.memory_space<vmem>>, %arg3: memref<1x64xf32, #tpu.memory_space<vmem>>, %arg4: memref<64x64xbf16, #tpu.memory_space<vmem>>, %arg5: memref<1x64xf32, #tpu.memory_space<vmem>>, %arg6: memref<64x64xbf16, #tpu.memory_space<vmem>>, %arg7: memref<1x64xf32, #tpu.memory_space<vmem>>, %arg8: memref<64x128xbf16, #tpu.memory_space<vmem>>, %arg9: memref<1x128xf32, #tpu.memory_space<vmem>>, %arg10: memref<8x128xbf16, #tpu.memory_space<vmem>>) attributes {dimension_semantics = [#tpu.dimension_semantics<parallel>], iteration_bounds = array<i64: 1>, scalar_prefetch = 0 : i64, scratch_operands = 0 : i64, tpu.core_type = #tpu.core_type<tc>, window_params = [{transform_indices = @transform_0, window_bounds = array<i64: 8, 32>}, {pipeline_mode = #tpu.pipeline_mode<synchronous>, transform_indices = @transform_1, window_bounds = array<i64: 32, 64>}, {pipeline_mode = #tpu.pipeline_mode<synchronous>, transform_indices = @transform_2, window_bounds = array<i64: 1, 64>}, {pipeline_mode = #tpu.pipeline_mode<synchronous>, transform_indices = @transform_3, window_bounds = array<i64: 64, 64>}, {pipeline_mode = #tpu.pipeline_mode<synchronous>, transform_indices = @transform_4, window_bounds = array<i64: 1, 64>}, {pipeline_mode = #tpu.pipeline_mode<synchronous>, transform_indices = @transform_5, window_bounds = array<i64: 64, 64>}, {pipeline_mode = #tpu.pipeline_mode<synchronous>, transform_indices = @transform_6, window_bounds = array<i64: 1, 64>}, {pipeline_mode = #tpu.pipeline_mode<synchronous>, transform_indices = @transform_7, window_bounds = array<i64: 64, 128>}, {pipeline_mode = #tpu.pipeline_mode<synchronous>, transform_indices = @transform_8, window_bounds = array<i64: 1, 128>}, {transform_indices = @transform_9, window_bounds = array<i64: 8, 128>}]} {
    %c0 = arith.constant 0 : index
    %c0_0 = arith.constant 0 : index
    %0 = vector.load %arg1[%c0, %c0_0] : memref<8x32xf32, #tpu.memory_space<vmem>>, vector<8x32xf32>
    %1 = arith.truncf %0 : vector<8x32xf32> to vector<8x32xbf16>
    %c0_1 = arith.constant 0 : index
    %c0_2 = arith.constant 0 : index
    %2 = vector.load %arg2[%c0_1, %c0_2] : memref<32x64xbf16, #tpu.memory_space<vmem>>, vector<32x64xbf16>
    %cst = arith.constant dense<0.000000e+00> : vector<8x64xf32>
    %3 = tpu.matmul %1, %2, %cst {dimension_numbers = #tpu.dot_dimension_numbers<[1], [0], [0], [1], [0, 0, 1, 1], [], []>} : vector<8x32xbf16>, vector<32x64xbf16>, vector<8x64xf32> -> vector<8x64xf32>
    %c0_3 = arith.constant 0 : index
    %c0_4 = arith.constant 0 : index
    %4 = vector.load %arg3[%c0_3, %c0_4] : memref<1x64xf32, #tpu.memory_space<vmem>>, vector<1x64xf32>
    %5 = vector.broadcast %4 : vector<1x64xf32> to vector<8x64xf32>
    %6 = arith.addf %3, %5 : vector<8x64xf32>
    %cst_5 = arith.constant 0.000000e+00 : f32
    %7 = vector.broadcast %cst_5 : f32 to vector<8x64xf32>
    %8 = arith.maximumf %6, %7 : vector<8x64xf32>
    %9 = arith.truncf %8 : vector<8x64xf32> to vector<8x64xbf16>
    %c0_6 = arith.constant 0 : index
    %c0_7 = arith.constant 0 : index
    %10 = vector.load %arg4[%c0_6, %c0_7] : memref<64x64xbf16, #tpu.memory_space<vmem>>, vector<64x64xbf16>
    %cst_8 = arith.constant dense<0.000000e+00> : vector<8x64xf32>
    %11 = tpu.matmul %9, %10, %cst_8 {dimension_numbers = #tpu.dot_dimension_numbers<[1], [0], [0], [1], [0, 0, 1, 1], [], []>} : vector<8x64xbf16>, vector<64x64xbf16>, vector<8x64xf32> -> vector<8x64xf32>
    %c0_9 = arith.constant 0 : index
    %c0_10 = arith.constant 0 : index
    %12 = vector.load %arg5[%c0_9, %c0_10] : memref<1x64xf32, #tpu.memory_space<vmem>>, vector<1x64xf32>
    %13 = vector.broadcast %12 : vector<1x64xf32> to vector<8x64xf32>
    %14 = arith.addf %11, %13 : vector<8x64xf32>
    %cst_11 = arith.constant 0.000000e+00 : f32
    %15 = vector.broadcast %cst_11 : f32 to vector<8x64xf32>
    %16 = arith.maximumf %14, %15 : vector<8x64xf32>
    %17 = arith.truncf %16 : vector<8x64xf32> to vector<8x64xbf16>
    %c0_12 = arith.constant 0 : index
    %c0_13 = arith.constant 0 : index
    %18 = vector.load %arg6[%c0_12, %c0_13] : memref<64x64xbf16, #tpu.memory_space<vmem>>, vector<64x64xbf16>
    %cst_14 = arith.constant dense<0.000000e+00> : vector<8x64xf32>
    %19 = tpu.matmul %17, %18, %cst_14 {dimension_numbers = #tpu.dot_dimension_numbers<[1], [0], [0], [1], [0, 0, 1, 1], [], []>} : vector<8x64xbf16>, vector<64x64xbf16>, vector<8x64xf32> -> vector<8x64xf32>
    %c0_15 = arith.constant 0 : index
    %c0_16 = arith.constant 0 : index
    %20 = vector.load %arg7[%c0_15, %c0_16] : memref<1x64xf32, #tpu.memory_space<vmem>>, vector<1x64xf32>
    %21 = vector.broadcast %20 : vector<1x64xf32> to vector<8x64xf32>
    %22 = arith.addf %19, %21 : vector<8x64xf32>
    %cst_17 = arith.constant 0.000000e+00 : f32
    %23 = vector.broadcast %cst_17 : f32 to vector<8x64xf32>
    %24 = arith.maximumf %22, %23 : vector<8x64xf32>
    %25 = arith.truncf %24 : vector<8x64xf32> to vector<8x64xbf16>
    %c0_18 = arith.constant 0 : index
    %c0_19 = arith.constant 0 : index
    %26 = vector.load %arg8[%c0_18, %c0_19] : memref<64x128xbf16, #tpu.memory_space<vmem>>, vector<64x128xbf16>
    %cst_20 = arith.constant dense<0.000000e+00> : vector<8x128xf32>
    %27 = tpu.matmul %25, %26, %cst_20 {dimension_numbers = #tpu.dot_dimension_numbers<[1], [0], [0], [1], [0, 0, 1, 1], [], []>} : vector<8x64xbf16>, vector<64x128xbf16>, vector<8x128xf32> -> vector<8x128xf32>
    %c0_21 = arith.constant 0 : index
    %c0_22 = arith.constant 0 : index
    %28 = vector.load %arg9[%c0_21, %c0_22] : memref<1x128xf32, #tpu.memory_space<vmem>>, vector<1x128xf32>
    %29 = vector.broadcast %28 : vector<1x128xf32> to vector<8x128xf32>
    %30 = arith.addf %27, %29 : vector<8x128xf32>
    %31 = arith.truncf %30 : vector<8x128xf32> to vector<8x128xbf16>
    %c0_23 = arith.constant 0 : index
    %c0_24 = arith.constant 0 : index
    %32 = vector.load %arg10[%c0_23, %c0_24] : memref<8x128xbf16, #tpu.memory_space<vmem>>, vector<8x128xbf16>
    tpu.vector_store %arg10[%c0_23, %c0_24], %31 {strides = array<i32>} : memref<8x128xbf16, #tpu.memory_space<vmem>>, vector<8x128xbf16>,
    return
  }
  func.func @transform_0(%arg0: i32) -> (i32, i32) {
    %c0_i32 = arith.constant 0 : i32
    %c0_i32_0 = arith.constant 0 : i32
    return %arg0, %c0_i32 : i32, i32
  }
  func.func @transform_1(%arg0: i32) -> (i32, i32) {
    %c0_i32 = arith.constant 0 : i32
    %c0_i32_0 = arith.constant 0 : i32
    %c0_i32_1 = arith.constant 0 : i32
    return %c0_i32, %c0_i32_0 : i32, i32
  }
  func.func @transform_2(%arg0: i32) -> (i32, i32) {
    %c0_i32 = arith.constant 0 : i32
    %c0_i32_0 = arith.constant 0 : i32
    %c0_i32_1 = arith.constant 0 : i32
    return %c0_i32, %c0_i32_0 : i32, i32
  }
  func.func @transform_3(%arg0: i32) -> (i32, i32) {
    %c0_i32 = arith.constant 0 : i32
    %c0_i32_0 = arith.constant 0 : i32
    %c0_i32_1 = arith.constant 0 : i32
    return %c0_i32, %c0_i32_0 : i32, i32
  }
  func.func @transform_4(%arg0: i32) -> (i32, i32) {
    %c0_i32 = arith.constant 0 : i32
    %c0_i32_0 = arith.constant 0 : i32
    %c0_i32_1 = arith.constant 0 : i32
    return %c0_i32, %c0_i32_0 : i32, i32
  }
  func.func @transform_5(%arg0: i32) -> (i32, i32) {
    %c0_i32 = arith.constant 0 : i32
    %c0_i32_0 = arith.constant 0 : i32
    %c0_i32_1 = arith.constant 0 : i32
    return %c0_i32, %c0_i32_0 : i32, i32
  }
  func.func @transform_6(%arg0: i32) -> (i32, i32) {
    %c0_i32 = arith.constant 0 : i32
    %c0_i32_0 = arith.constant 0 : i32
    %c0_i32_1 = arith.constant 0 : i32
    return %c0_i32, %c0_i32_0 : i32, i32
  }
  func.func @transform_7(%arg0: i32) -> (i32, i32) {
    %c0_i32 = arith.constant 0 : i32
    %c0_i32_0 = arith.constant 0 : i32
    %c0_i32_1 = arith.constant 0 : i32
    return %c0_i32, %c0_i32_0 : i32, i32
  }
  func.func @transform_8(%arg0: i32) -> (i32, i32) {
    %c0_i32 = arith.constant 0 : i32
    %c0_i32_0 = arith.constant 0 : i32
    %c0_i32_1 = arith.constant 0 : i32
    return %c0_i32, %c0_i32_0 : i32, i32
  }
  func.func @transform_9(%arg0: i32) -> (i32, i32) {
    %c0_i32 = arith.constant 0 : i32
    %c0_i32_0 = arith.constant 0 : i32
    return %arg0, %c0_i32 : i32, i32
  }
}

</mosaic_0001>

<bundles_post_ra>
// kernel: _mlp_forward_padded.1
= control target key start
LH: loop header
LB: loop body
LE: loop exit
PB: predicated region body
PF: predicated region fallthrough
CT: control target
= control target key end

     0   :  { %14 = vsyncpa [#allocation3], 0  ;;  %s804_s0 = inlined_call_operand.hbm [shape: f32[8,32], index: 0, kind: input, shape index: {}]   ;;  %s805_s1 = inlined_call_operand.hbm [shape: bf16[32,64], index: 1, kind: input, shape index: {}]   ;;  %s806_s2 = inlined_call_operand.vmem [shape: f32[1,64], index: 2, kind: input, shape index: {}]   ;;  %s807_s3 = inlined_call_operand.hbm [shape: bf16[64,64], index: 3, kind: input, shape index: {}]   ;;  %s808_s4 = inlined_call_operand.vmem [shape: f32[1,64], index: 4, kind: input, shape index: {}]   ;;  %s809_s5 = inlined_call_operand.hbm [shape: bf16[64,64], index: 5, kind: input, shape index: {}]   ;;  %s810_s6 = inlined_call_operand.vmem [shape: f32[1,64], index: 6, kind: input, shape index: {}]   ;;  %s811_s7 = inlined_call_operand.hbm [shape: bf16[64,128], index: 7, kind: input, shape index: {}]   ;;  %s812_s8 = inlined_call_operand.vmem [shape: f32[1,128], index: 8, kind: input, shape index: {}]   ;;  %s813_s9 = inlined_call_operand.hbm [shape: bf16[8,128], index: 9, kind: output, shape index: {}]  }
   0x1   :  { %15 = vsyncpa [#allocation6], 0 }
   0x2   :  { %16 = vsyncpa [#allocation9], 0 }
   0x3   :  { %17 = vsyncpa [#allocation4], 0  ;;  %s677_s30 = smov [#allocation5]  }
   0x4   :  { %s33_s10 = sshll.u32 %s677_s30, 4  ;;  %s34_s10 = int_to_ptr.vmem [resolvable:$true] %s33_s10 }
   0x5   :  { %s557_s11 = scalar_lea.vmem %s34_s10, 256  ;;  %p562_p1 = scmp.lt.s32.totalorder %s34_s10, %s34_s10 }
   0x6   :  { %p558_p0 = scmp.ne.s32.totalorder %s34_s10, %s557_s11  ;;  %p563_p2 = scmp.lt.s32.totalorder %s557_s11, %s557_s11 }
   0x8   :  { %p564_p3 = por %p563_p2, %p562_p1 }
   0xa   :  { %p565_p4 = pnand %p564_p3, %p558_p0 }
   0xc   :  { %568 = shalt.err (!%p565_p4)
}
   0xd   :  { %s678_s12 = smov 64   ;;  %s679_s13 = smov 4  }
   0xe   :  { %39 = dma.hbm_to_vmem [thread:$0]  %s805_s1, 256, %s34_s10, [#allocation6], %s678_s12, %s678_s12, %s679_s13  }
   0xf   :  { %s680_s16 = smov [#allocation8]   ;;  %s681_s18 = smov [#allocation2]  }
  0x10   :  { %s61_s17 = sshll.u32 %s680_s16, 4  ;;  %s24_s19 = sshll.u32 %s681_s18, 4  ;;  %s62_s17 = int_to_ptr.vmem [resolvable:$true] %s61_s17  ;;  %s25_s19 = int_to_ptr.vmem [resolvable:$true] %s24_s19 }
  0x11   :  { %s577_s20 = scalar_lea.vmem %s62_s17, 512  ;;  %p582_p6 = scmp.lt.s32.totalorder %s62_s17, %s62_s17 }
  0x12   :  { %p578_p5 = scmp.ne.s32.totalorder %s62_s17, %s577_s20  ;;  %p583_p7 = scmp.lt.s32.totalorder %s577_s20, %s577_s20 }
  0x14   :  { %p584_p8 = por %p583_p7, %p582_p6 }
  0x16   :  { %p585_p9 = pnand %p584_p8, %p578_p5 }
  0x18   :  { %588 = shalt.err (!%p585_p9)
}
  0x19   :  { %67 = dma.hbm_to_vmem [thread:$0]  %s809_s5, 512, %s62_s17, [#allocation9], %s678_s12, %s678_s12, %s679_s13  }
  0x1a   :  { %s597_s1 = scalar_lea.vmem %s25_s19, 128  ;;  %p602_p11 = scmp.lt.s32.totalorder %s25_s19, %s25_s19 }
  0x1b   :  { %p598_p10 = scmp.ne.s32.totalorder %s25_s19, %s597_s1  ;;  %p603_p12 = scmp.lt.s32.totalorder %s597_s1, %s597_s1 }
  0x1d   :  { %p604_p13 = por %p603_p12, %p602_p11 }
  0x1f   :  { %p605_p0 = pnand %p604_p13, %p598_p10 }
  0x21   :  { %608 = shalt.err (!%p605_p0)
}
  0x22   :  { %27 = dma.hbm_to_vmem [thread:$0]  %s804_s0, 128, %s25_s19, [#allocation3]  }
  0x23   :  { %s682_s25 = smov [#allocation7]   ;;  %s683_s27 = smov [#allocation10]  }
  0x24   :  { %s47_s26 = sshll.u32 %s682_s25, 4  ;;  %s75_s28 = sshll.u32 %s683_s27, 4  ;;  %s48_s26 = int_to_ptr.vmem [resolvable:$true] %s47_s26  ;;  %s76_s28 = int_to_ptr.vmem [resolvable:$true] %s75_s28 }
  0x25   :  { %s617_s29 = scalar_lea.vmem %s48_s26, 512  ;;  %p622_p2 = scmp.lt.s32.totalorder %s48_s26, %s48_s26 }
  0x26   :  { %p618_p1 = scmp.ne.s32.totalorder %s48_s26, %s617_s29  ;;  %p623_p3 = scmp.lt.s32.totalorder %s617_s29, %s617_s29 }
  0x28   :  { %p624_p4 = por %p623_p3, %p622_p2 }
  0x2a   :  { %p625_p5 = pnand %p624_p4, %p618_p1 }
  0x2c   :  { %628 = shalt.err (!%p625_p5)
}
  0x2d   :  { %53 = dma.hbm_to_vmem [thread:$0]  %s807_s3, 512, %s48_s26, [#allocation6], %s678_s12, %s678_s12, %s679_s13  }
  0x2e   :  { %s637_s0 = scalar_lea.vmem %s76_s28, 512  ;;  %p642_p7 = scmp.lt.s32.totalorder %s76_s28, %s76_s28 }
  0x2f   :  { %p638_p6 = scmp.ne.s32.totalorder %s76_s28, %s637_s0  ;;  %p643_p8 = scmp.lt.s32.totalorder %s637_s0, %s637_s0 }
  0x31   :  { %p644_p9 = por %p643_p8, %p642_p7 }
  0x33   :  { %p645_p10 = pnand %p644_p9, %p638_p6 }
  0x35   :  { %648 = shalt.err (!%p645_p10)
}
  0x36   :  { %81 = dma.hbm_to_vmem [thread:$0]  %s811_s7, 512, %s76_s28, [#allocation9], %s678_s12, %s678_s12, %s679_s13  }
  0x37   :  { %669 = dma.done.wait [#allocation3], 128  }
  0x38   :  { %670 = vsyncadd [#allocation3], 4294967168 }
  0x39   :  { %671 = dma.done.wait [#allocation6], 768  }
  0x3a   :  { %672 = vsyncadd [#allocation6], 4294966528 }
  0x3b   :  { %673 = dma.done.wait [#allocation9], 1024  }
  0x3c   :  { %674 = vsyncadd [#allocation9], 4294966272  ;;  %v684_v0 = vmov 0.0   ;;  %vm685_vm0 = vmmov 0   ;;  %v535_v1 = vld [vmem:[#allocation5 + $0x8] sm:$0xff]   ;;  %v536_v2 = vld [vmem:[#allocation5] sm:$0xff]  }
  0x3d   :  { %481 = vmatprep.subr.bf16.mxu0 %v684_v0  ;;  %485 = vmatprep.mubr.msk.bf16.mxu0 %vm685_vm0, %v684_v0  ;;  %v100_v3 = vld [vmem:[#allocation2] sm:$0xff]  ;;  %v537_v4 = vld [vmem:[#allocation7 + $0x18] sm:$0xff]   ;;  %vm125_vm1 = vcmask 261120   ;;  %v538_v5 = vld [vmem:[#allocation7 + $0x10] sm:$0xff]   ;;  %vm210_vm2 = vcmask 523264   ;;  %s686_s16 = smov [#allocation11]  }
  0x3e   :  { %489 = vmatprep.subr.bf16.mxu1 %v684_v0  ;;  %497 = vmatprep.mubr.msk.bf16.mxu1 %vm685_vm0, %v684_v0  ;;  %v101_v6 = vpack.c.bf16 %v100_v3, %v100_v3  ;;  %v539_v7 = vld [vmem:[#allocation7 + $0x8] sm:$0xff]   ;;  %v540_v8 = vld [vmem:[#allocation7] sm:$0xff]   ;;  %v541_v9 = vld [vmem:[#allocation8 + $0x18] sm:$0xff]   ;;  %s430_s17 = sshll.u32 %s686_s16, 4  ;;  %s431_s17 = int_to_ptr.vmem [resolvable:$true] %s430_s17 }
  0x3f   :  { %482 = vmatpush3.bf16.msra.mxu0 %v535_v1  ;;  %490 = vmatpush3.bf16.msra.mxu1 %v537_v4  ;;  %v542_v10 = vld [vmem:[#allocation8 + $0x10] sm:$0xff]   ;;  %v441_v11 = vld [vmem:[%s806_s2] ss:$0 sm:$0xff]  ;;  %v544_v20 = vld [vmem:[#allocation8] sm:$0xff]   ;;  %p654_p12 = scmp.lt.s32.totalorder %s431_s17, %s431_s17 }
  0x40   :  { %483 = vmatprep.subr.bf16.mxu0 %v684_v0  ;;  %491 = vmatprep.subr.bf16.mxu1 %v684_v0  ;;  %v543_v19 = vld [vmem:[#allocation8 + $0x8] sm:$0xff]   ;;  %v545_v21 = vld [vmem:[#allocation10 + $0x18] sm:$0xff]   ;;  %v546_v22 = vld [vmem:[#allocation10 + $0x10] sm:$0xff]  }
  0x41   :  { %v445_v23 = vld [vmem:[%s808_s4] ss:$0 sm:$0xff]  ;;  %v548_v32 = vld [vmem:[#allocation10] sm:$0xff]  }
  0x42   :  { %v547_v31 = vld [vmem:[#allocation10 + $0x8] sm:$0xff]  }
  0x43   :  { %484 = vmatpush3.bf16.msra.mxu0 %v536_v2  ;;  %492 = vmatpush3.bf16.msra.mxu1 %v538_v5  ;;  %v451_v33 = vld [vmem:[%s810_s6] ss:$0 sm:$0xff]  ;;  %s649_s6 = scalar_lea.vmem %s431_s17, 64 }
  0x44   :  { %501 = vmatprep.subr.bf16.mxu0 %v684_v0  ;;  %493 = vmatprep.subr.bf16.mxu1 %v684_v0  ;;  %v457_v41 = vld [vmem:[%s812_s8] ss:$0 sm:$0xff]  ;;  %p650_p11 = scmp.ne.s32.totalorder %s431_s17, %s649_s6  ;;  %p655_p13 = scmp.lt.s32.totalorder %s649_s6, %s649_s6 }
  0x46   :  { %486 = vmatmul.mubr.msk.bf16.vlgmr.msra.gmra.mxu0 %vm125_vm1, %v101_v6  ;;  %p656_p0 = por %p655_p13, %p654_p12 }
  0x47   :  { %509 = vmatprep.mubr.msk.bf16.mxu0 %vm685_vm0, %v684_v0  ;;  %494 = vmatpush3.bf16.msra.mxu1 %v539_v7 }
  0x48   :  { %495 = vmatprep.subr.bf16.mxu1 %v684_v0  ;;  %502 = vmatpush3.bf16.msra.mxu0 %v541_v9  ;;  %p657_p1 = pnand %p656_p0, %p650_p11 }
  0x49   :  { %503 = vmatprep.subr.bf16.mxu0 %v684_v0 }
  0x4b   :  { %496 = vmatpush3.bf16.msra.mxu1 %v540_v8 }
  0x4c   :  { %513 = vmatprep.subr.bf16.mxu1 %v684_v0  ;;  %504 = vmatpush3.bf16.msra.mxu0 %v542_v10 }
  0x4d   :  { %505 = vmatprep.subr.bf16.mxu0 %v684_v0 }
  0x50   :  { %506 = vmatpush3.bf16.msra.mxu0 %v543_v19 }
  0x51   :  { %507 = vmatprep.subr.bf16.mxu0 %v684_v0 }
  0x54   :  { %508 = vmatpush3.bf16.msra.mxu0 %v544_v20 }
 0x106   :  { %v163_v12 = vpop.f32.mrf.mxu0 }
 0x107   :  { %v164_v13 = vadd.f32 %v441_v11, %v163_v12 }
 0x108   :  { %v487_v14 = vpop.f32.mrf.mxu0 }
 0x109   :  { %v169_v15 = vmax.f32 %v164_v13, 0.0 }
 0x10a   :  { %v166_v16 = vpop.f32.mrf.mxu0 }
 0x10b   :  { %v170_v17 = vpack.c.bf16 %v169_v15, %v169_v15 }
 0x10c   :  { %v488_v18 = vpop.f32.mrf.mxu0 }
 0x10d   :  { %498 = vmatmul.mubr.msk.bf16.vlgmr.msra.gmra.mxu1 %vm210_vm2, %v170_v17 }
 0x10e   :  { %521 = vmatprep.mubr.msk.bf16.mxu1 %vm685_vm0, %v684_v0  ;;  %514 = vmatpush3.bf16.msra.mxu1 %v545_v21 }
 0x10f   :  { %515 = vmatprep.subr.bf16.mxu1 %v684_v0 }
 0x112   :  { %516 = vmatpush3.bf16.msra.mxu1 %v546_v22 }
 0x113   :  { %517 = vmatprep.subr.bf16.mxu1 %v684_v0 }
 0x116   :  { %518 = vmatpush3.bf16.msra.mxu1 %v547_v31 }
 0x117   :  { %519 = vmatprep.subr.bf16.mxu1 %v684_v0 }
 0x11a   :  { %520 = vmatpush3.bf16.msra.mxu1 %v548_v32 }
 0x1cd   :  { %v248_v24 = vpop.f32.mrf.mxu1 }
 0x1ce   :  { %v249_v25 = vadd.f32 %v445_v23, %v248_v24 }
 0x1cf   :  { %v499_v26 = vpop.f32.mrf.mxu1 }
 0x1d0   :  { %v254_v27 = vmax.f32 %v249_v25, 0.0 }
 0x1d1   :  { %v251_v28 = vpop.f32.mrf.mxu1 }
 0x1d2   :  { %v255_v29 = vpack.c.bf16 %v254_v27, %v254_v27 }
 0x1d3   :  { %v500_v30 = vpop.f32.mrf.mxu1 }
 0x1d4   :  { %510 = vmatmul.mubr.msk.bf16.vlgmr.msra.gmra.mxu0 %vm210_vm2, %v255_v29 }
 0x294   :  { %v332_v34 = vpop.f32.mrf.mxu0 }
 0x295   :  { %v333_v35 = vadd.f32 %v451_v33, %v332_v34 }
 0x296   :  { %v511_v36 = vpop.f32.mrf.mxu0 }
 0x297   :  { %v338_v37 = vmax.f32 %v333_v35, 0.0 }
 0x298   :  { %v335_v38 = vpop.f32.mrf.mxu0 }
 0x299   :  { %v339_v39 = vpack.c.bf16 %v338_v37, %v338_v37 }
 0x29a   :  { %v512_v40 = vpop.f32.mrf.mxu0 }
 0x29b   :  { %522 = vmatmul.mubr.msk.bf16.vlgmr.msra.gmra.mxu1 %vm210_vm2, %v339_v39 }
 0x35b   :  { %v416_v42 = vpop.f32.mrf.mxu1 }
 0x35c   :  { %v417_v43 = vadd.f32 %v457_v41, %v416_v42 }
 0x35d   :  { %v523_v44 = vpop.f32.mrf.mxu1 }
 0x35e   :  { %v422_v45 = vpack.c.bf16 %v417_v43, %v417_v43 }
 0x35f   :  { %v419_v46 = vpop.f32.mrf.mxu1 }
 0x360   :  { %423 = vst [vmem:[#allocation11] sm:$0xf] %v422_v45 }
 0x361   :  { %v524_v47 = vpop.f32.mrf.mxu1 }
 0x362   :  { %660 = shalt.err (!%p657_p1)
}
 0x363   :  { %433 = dma.vmem_to_hbm [thread:$0]  %s431_s17, 64, %s813_s9, [#allocation4]  }
 0x364   :  { %675 = dma.done.wait [#allocation4], 64  }
 0x365   :  { %676 = vsyncadd [#allocation4], 4294967232 }
 0x366   :  { %437 = vsyncpa [#allocation3], 1 }
 0x367   :  { %438 = vsyncpa [#allocation6], 1 }
 0x368   :  { %439 = vsyncpa [#allocation9], 1 }
 0x369   :  { %440 = vsyncpa [#allocation4], 1 }

// kernel: _mlp_forward_padded.1
= control target key start
LH: loop header
LB: loop body
LE: loop exit
PB: predicated region body
PF: predicated region fallthrough
CT: control target
= control target key end

     0   :  { %14 = vsyncpa [#allocation3], 0  ;;  %s804_s0 = inlined_call_operand.hbm [shape: f32[8,32], index: 0, kind: input, shape index: {}]   ;;  %s805_s1 = inlined_call_operand.hbm [shape: bf16[32,64], index: 1, kind: input, shape index: {}]   ;;  %s806_s2 = inlined_call_operand.vmem [shape: f32[1,64], index: 2, kind: input, shape index: {}]   ;;  %s807_s3 = inlined_call_operand.hbm [shape: bf16[64,64], index: 3, kind: input, shape index: {}]   ;;  %s808_s4 = inlined_call_operand.vmem [shape: f32[1,64], index: 4, kind: input, shape index: {}]   ;;  %s809_s5 = inlined_call_operand.hbm [shape: bf16[64,64], index: 5, kind: input, shape index: {}]   ;;  %s810_s6 = inlined_call_operand.vmem [shape: f32[1,64], index: 6, kind: input, shape index: {}]   ;;  %s811_s7 = inlined_call_operand.hbm [shape: bf16[64,128], index: 7, kind: input, shape index: {}]   ;;  %s812_s8 = inlined_call_operand.vmem [shape: f32[1,128], index: 8, kind: input, shape index: {}]   ;;  %s813_s9 = inlined_call_operand.hbm [shape: bf16[8,128], index: 9, kind: output, shape index: {}]  }
   0x1   :  { %15 = vsyncpa [#allocation6], 0 }
   0x2   :  { %16 = vsyncpa [#allocation9], 0 }
   0x3   :  { %17 = vsyncpa [#allocation4], 0  ;;  %s677_s30 = smov [#allocation5]  }
   0x4   :  { %s33_s10 = sshll.u32 %s677_s30, 4  ;;  %s34_s10 = int_to_ptr.vmem [resolvable:$true] %s33_s10 }
   0x5   :  { %s557_s11 = scalar_lea.vmem %s34_s10, 256  ;;  %p562_p1 = scmp.lt.s32.totalorder %s34_s10, %s34_s10 }
   0x6   :  { %p558_p0 = scmp.ne.s32.totalorder %s34_s10, %s557_s11  ;;  %p563_p2 = scmp.lt.s32.totalorder %s557_s11, %s557_s11 }
   0x8   :  { %p564_p3 = por %p563_p2, %p562_p1 }
   0xa   :  { %p565_p4 = pnand %p564_p3, %p558_p0 }
   0xc   :  { %568 = shalt.err (!%p565_p4)
}
   0xd   :  { %s678_s12 = smov 64   ;;  %s679_s13 = smov 4  }
   0xe   :  { %39 = dma.hbm_to_vmem [thread:$0]  %s805_s1, 256, %s34_s10, [#allocation6], %s678_s12, %s678_s12, %s679_s13  }
   0xf   :  { %s680_s16 = smov [#allocation8]   ;;  %s681_s18 = smov [#allocation2]  }
  0x10   :  { %s61_s17 = sshll.u32 %s680_s16, 4  ;;  %s24_s19 = sshll.u32 %s681_s18, 4  ;;  %s62_s17 = int_to_ptr.vmem [resolvable:$true] %s61_s17  ;;  %s25_s19 = int_to_ptr.vmem [resolvable:$true] %s24_s19 }
  0x11   :  { %s577_s20 = scalar_lea.vmem %s62_s17, 512  ;;  %p582_p6 = scmp.lt.s32.totalorder %s62_s17, %s62_s17 }
  0x12   :  { %p578_p5 = scmp.ne.s32.totalorder %s62_s17, %s577_s20  ;;  %p583_p7 = scmp.lt.s32.totalorder %s577_s20, %s577_s20 }
  0x14   :  { %p584_p8 = por %p583_p7, %p582_p6 }
  0x16   :  { %p585_p9 = pnand %p584_p8, %p578_p5 }
  0x18   :  { %588 = shalt.err (!%p585_p9)
}
  0x19   :  { %67 = dma.hbm_to_vmem [thread:$0]  %s809_s5, 512, %s62_s17, [#allocation9], %s678_s12, %s678_s12, %s679_s13  }
  0x1a   :  { %s597_s1 = scalar_lea.vmem %s25_s19, 128  ;;  %p602_p11 = scmp.lt.s32.totalorder %s25_s19, %s25_s19 }
  0x1b   :  { %p598_p10 = scmp.ne.s32.totalorder %s25_s19, %s597_s1  ;;  %p603_p12 = scmp.lt.s32.totalorder %s597_s1, %s597_s1 }
  0x1d   :  { %p604_p13 = por %p603_p12, %p602_p11 }
  0x1f   :  { %p605_p0 = pnand %p604_p13, %p598_p10 }
  0x21   :  { %608 = shalt.err (!%p605_p0)
}
  0x22   :  { %27 = dma.hbm_to_vmem [thread:$0]  %s804_s0, 128, %s25_s19, [#allocation3]  }
  0x23   :  { %s682_s25 = smov [#allocation7]   ;;  %s683_s27 = smov [#allocation10]  }
  0x24   :  { %s47_s26 = sshll.u32 %s682_s25, 4  ;;  %s75_s28 = sshll.u32 %s683_s27, 4  ;;  %s48_s26 = int_to_ptr.vmem [resolvable:$true] %s47_s26  ;;  %s76_s28 = int_to_ptr.vmem [resolvable:$true] %s75_s28 }
  0x25   :  { %s617_s29 = scalar_lea.vmem %s48_s26, 512  ;;  %p622_p2 = scmp.lt.s32.totalorder %s48_s26, %s48_s26 }
  0x26   :  { %p618_p1 = scmp.ne.s32.totalorder %s48_s26, %s617_s29  ;;  %p623_p3 = scmp.lt.s32.totalorder %s617_s29, %s617_s29 }
  0x28   :  { %p624_p4 = por %p623_p3, %p622_p2 }
  0x2a   :  { %p625_p5 = pnand %p624_p4, %p618_p1 }
  0x2c   :  { %628 = shalt.err (!%p625_p5)
}
  0x2d   :  { %53 = dma.hbm_to_vmem [thread:$0]  %s807_s3, 512, %s48_s26, [#allocation6], %s678_s12, %s678_s12, %s679_s13  }
  0x2e   :  { %s637_s0 = scalar_lea.vmem %s76_s28, 512  ;;  %p642_p7 = scmp.lt.s32.totalorder %s76_s28, %s76_s28 }
  0x2f   :  { %p638_p6 = scmp.ne.s32.totalorder %s76_s28, %s637_s0  ;;  %p643_p8 = scmp.lt.s32.totalorder %s637_s0, %s637_s0 }
  0x31   :  { %p644_p9 = por %p643_p8, %p642_p7 }
  0x33   :  { %p645_p10 = pnand %p644_p9, %p638_p6 }
  0x35   :  { %648 = shalt.err (!%p645_p10)
}
  0x36   :  { %81 = dma.hbm_to_vmem [thread:$0]  %s811_s7, 512, %s76_s28, [#allocation9], %s678_s12, %s678_s12, %s679_s13  }
  0x37   :  { %669 = dma.done.wait [#allocation3], 128  }
  0x38   :  { %670 = vsyncadd [#allocation3], 4294967168 }
  0x39   :  { %671 = dma.done.wait [#allocation6], 768  }
  0x3a   :  { %672 = vsyncadd [#allocation6], 4294966528 }
  0x3b   :  { %673 = dma.done.wait [#allocation9], 1024  }
  0x3c   :  { %674 = vsyncadd [#allocation9], 4294966272  ;;  %v684_v0 = vmov 0.0   ;;  %vm685_vm0 = vmmov 0   ;;  %v535_v1 = vld [vmem:[#allocation5 + $0x8] sm:$0xff]   ;;  %v536_v2 = vld [vmem:[#allocation5] sm:$0xff]  }
  0x3d   :  { %481 = vmatprep.subr.bf16.mxu0 %v684_v0  ;;  %485 = vmatprep.mubr.msk.bf16.mxu0 %vm685_vm0, %v684_v0  ;;  %v100_v3 = vld [vmem:[#allocation2] sm:$0xff]  ;;  %v537_v4 = vld [vmem:[#allocation7 + $0x18] sm:$0xff]   ;;  %vm125_vm1 = vcmask 261120   ;;  %v538_v5 = vld [vmem:[#allocation7 + $0x10] sm:$0xff]   ;;  %vm210_vm2 = vcmask 523264   ;;  %s686_s16 = smov [#allocation11]  }
  0x3e   :  { %489 = vmatprep.subr.bf16.mxu1 %v684_v0  ;;  %497 = vmatprep.mubr.msk.bf16.mxu1 %vm685_vm0, %v684_v0  ;;  %v101_v6 = vpack.c.bf16 %v100_v3, %v100_v3  ;;  %v539_v7 = vld [vmem:[#allocation7 + $0x8] sm:$0xff]   ;;  %v540_v8 = vld [vmem:[#allocation7] sm:$0xff]   ;;  %v541_v9 = vld [vmem:[#allocation8 + $0x18] sm:$0xff]   ;;  %s430_s17 = sshll.u32 %s686_s16, 4  ;;  %s431_s17 = int_to_ptr.vmem [resolvable:$true] %s430_s17 }
  0x3f   :  { %482 = vmatpush3.bf16.msra.mxu0 %v535_v1  ;;  %490 = vmatpush3.bf16.msra.mxu1 %v537_v4  ;;  %v542_v10 = vld [vmem:[#allocation8 + $0x10] sm:$0xff]   ;;  %v441_v11 = vld [vmem:[%s806_s2] ss:$0 sm:$0xff]  ;;  %v544_v20 = vld [vmem:[#allocation8] sm:$0xff]   ;;  %p654_p12 = scmp.lt.s32.totalorder %s431_s17, %s431_s17 }
  0x40   :  { %483 = vmatprep.subr.bf16.mxu0 %v684_v0  ;;  %491 = vmatprep.subr.bf16.mxu1 %v684_v0  ;;  %v543_v19 = vld [vmem:[#allocation8 + $0x8] sm:$0xff]   ;;  %v545_v21 = vld [vmem:[#allocation10 + $0x18] sm:$0xff]   ;;  %v546_v22 = vld [vmem:[#allocation10 + $0x10] sm:$0xff]  }
  0x41   :  { %v445_v23 = vld [vmem:[%s808_s4] ss:$0 sm:$0xff]  ;;  %v548_v32 = vld [vmem:[#allocation10] sm:$0xff]  }
  0x42   :  { %v547_v31 = vld [vmem:[#allocation10 + $0x8] sm:$0xff]  }
  0x43   :  { %484 = vmatpush3.bf16.msra.mxu0 %v536_v2  ;;  %492 = vmatpush3.bf16.msra.mxu1 %v538_v5  ;;  %v451_v33 = vld [vmem:[%s810_s6] ss:$0 sm:$0xff]  ;;  %s649_s6 = scalar_lea.vmem %s431_s17, 64 }
  0x44   :  { %501 = vmatprep.subr.bf16.mxu0 %v684_v0  ;;  %493 = vmatprep.subr.bf16.mxu1 %v684_v0  ;;  %v457_v41 = vld [vmem:[%s812_s8] ss:$0 sm:$0xff]  ;;  %p650_p11 = scmp.ne.s32.totalorder %s431_s17, %s649_s6  ;;  %p655_p13 = scmp.lt.s32.totalorder %s649_s6, %s649_s6 }
  0x46   :  { %486 = vmatmul.mubr.msk.bf16.vlgmr.msra.gmra.mxu0 %vm125_vm1, %v101_v6  ;;  %p656_p0 = por %p655_p13, %p654_p12 }
  0x47   :  { %509 = vmatprep.mubr.msk.bf16.mxu0 %vm685_vm0, %v684_v0  ;;  %494 = vmatpush3.bf16.msra.mxu1 %v539_v7 }
  0x48   :  { %495 = vmatprep.subr.bf16.mxu1 %v684_v0  ;;  %502 = vmatpush3.bf16.msra.mxu0 %v541_v9  ;;  %p657_p1 = pnand %p656_p0, %p650_p11 }
  0x49   :  { %503 = vmatprep.subr.bf16.mxu0 %v684_v0 }
  0x4b   :  { %496 = vmatpush3.bf16.msra.mxu1 %v540_v8 }
  0x4c   :  { %513 = vmatprep.subr.bf16.mxu1 %v684_v0  ;;  %504 = vmatpush3.bf16.msra.mxu0 %v542_v10 }
  0x4d   :  { %505 = vmatprep.subr.bf16.mxu0 %v684_v0 }
  0x50   :  { %506 = vmatpush3.bf16.msra.mxu0 %v543_v19 }
  0x51   :  { %507 = vmatprep.subr.bf16.mxu0 %v684_v0 }
  0x54   :  { %508 = vmatpush3.bf16.msra.mxu0 %v544_v20 }
 0x106   :  { %v163_v12 = vpop.f32.mrf.mxu0 }
 0x107   :  { %v164_v13 = vadd.f32 %v441_v11, %v163_v12 }
 0x108   :  { %v487_v14 = vpop.f32.mrf.mxu0 }
 0x109   :  { %v169_v15 = vmax.f32 %v164_v13, 0.0 }
 0x10a   :  { %v166_v16 = vpop.f32.mrf.mxu0 }
 0x10b   :  { %v170_v17 = vpack.c.bf16 %v169_v15, %v169_v15 }
 0x10c   :  { %v488_v18 = vpop.f32.mrf.mxu0 }
 0x10d   :  { %498 = vmatmul.mubr.msk.bf16.vlgmr.msra.gmra.mxu1 %vm210_vm2, %v170_v17 }
 0x10e   :  { %521 = vmatprep.mubr.msk.bf16.mxu1 %vm685_vm0, %v684_v0  ;;  %514 = vmatpush3.bf16.msra.mxu1 %v545_v21 }
 0x10f   :  { %515 = vmatprep.subr.bf16.mxu1 %v684_v0 }
 0x112   :  { %516 = vmatpush3.bf16.msra.mxu1 %v546_v22 }
 0x113   :  { %517 = vmatprep.subr.bf16.mxu1 %v684_v0 }
 0x116   :  { %518 = vmatpush3.bf16.msra.mxu1 %v547_v31 }
 0x117   :  { %519 = vmatprep.subr.bf16.mxu1 %v684_v0 }
 0x11a   :  { %520 = vmatpush3.bf16.msra.mxu1 %v548_v32 }
 0x1cd   :  { %v248_v24 = vpop.f32.mrf.mxu1 }
 0x1ce   :  { %v249_v25 = vadd.f32 %v445_v23, %v248_v24 }
 0x1cf   :  { %v499_v26 = vpop.f32.mrf.mxu1 }
 0x1d0   :  { %v254_v27 = vmax.f32 %v249_v25, 0.0 }
 0x1d1   :  { %v251_v28 = vpop.f32.mrf.mxu1 }
 0x1d2   :  { %v255_v29 = vpack.c.bf16 %v254_v27, %v254_v27 }
 0x1d3   :  { %v500_v30 = vpop.f32.mrf.mxu1 }
 0x1d4   :  { %510 = vmatmul.mubr.msk.bf16.vlgmr.msra.gmra.mxu0 %vm210_vm2, %v255_v29 }
 0x294   :  { %v332_v34 = vpop.f32.mrf.mxu0 }
 0x295   :  { %v333_v35 = vadd.f32 %v451_v33, %v332_v34 }
 0x296   :  { %v511_v36 = vpop.f32.mrf.mxu0 }
 0x297   :  { %v338_v37 = vmax.f32 %v333_v35, 0.0 }
 0x298   :  { %v335_v38 = vpop.f32.mrf.mxu0 }
 0x299   :  { %v339_v39 = vpack.c.bf16 %v338_v37, %v338_v37 }
 0x29a   :  { %v512_v40 = vpop.f32.mrf.mxu0 }
 0x29b   :  { %522 = vmatmul.mubr.msk.bf16.vlgmr.msra.gmra.mxu1 %vm210_vm2, %v339_v39 }
 0x35b   :  { %v416_v42 = vpop.f32.mrf.mxu1 }
 0x35c   :  { %v417_v43 = vadd.f32 %v457_v41, %v416_v42 }
 0x35d   :  { %v523_v44 = vpop.f32.mrf.mxu1 }
 0x35e   :  { %v422_v45 = vpack.c.bf16 %v417_v43, %v417_v43 }
 0x35f   :  { %v419_v46 = vpop.f32.mrf.mxu1 }
 0x360   :  { %423 = vst [vmem:[#allocation11] sm:$0xf] %v422_v45 }
 0x361   :  { %v524_v47 = vpop.f32.mrf.mxu1 }
 0x362   :  { %660 = shalt.err (!%p657_p1)
}
 0x363   :  { %433 = dma.vmem_to_hbm [thread:$0]  %s431_s17, 64, %s813_s9, [#allocation4]  }
 0x364   :  { %675 = dma.done.wait [#allocation4], 64  }
 0x365   :  { %676 = vsyncadd [#allocation4], 4294967232 }
 0x366   :  { %437 = vsyncpa [#allocation3], 1 }
 0x367   :  { %438 = vsyncpa [#allocation6], 1 }
 0x368   :  { %439 = vsyncpa [#allocation9], 1 }
 0x369   :  { %440 = vsyncpa [#allocation4], 1 }

</bundles_post_ra>
